<compile_context>
chip_gen: v7x
topology: tpu7x:2x2x1
jax: 0.10.0
libtpu: 0.0.40
codegen_flags: <defaults>
</compile_context>

<pallas_src>
import functools

import jax
import jax.numpy as jnp
from jax.experimental import pallas as pl
from jax.experimental.pallas import tpu as pltpu


def _dice_partials_kernel(pred_ref, gt_ref, inter_out, zy_out,
                          inter_acc, zy_acc, *,
                          activation, num_classes, valid_cols,
                          lane_tile, acc_w, mask_tail):
    m = pl.program_id(1)

    # Per-image accumulator reset (required so the N axis can be 'parallel').
    @pl.when(m == 0)
    def _():
        inter_acc[...] = jnp.zeros_like(inter_acc)
        zy_acc[...] = jnp.zeros_like(zy_acc)

    class_ids = jax.lax.broadcasted_iota(jnp.int32, (num_classes, 1), 0)

    inter_loc = None
    zy_loc = None
    # Static sub-chunk loop: fold the whole lane tile into narrow (C, acc_w)
    # vreg-resident partials, then do ONE read-modify-write per accumulator
    # per grid step (accumulator VMEM traffic independent of lane_tile).
    for j in range(lane_tile // acc_w):
        js = j * acc_w
        pred_j = pred_ref[0, :, js:js + acc_w].astype(jnp.float32)   # (C, acc_w)
        gt_j = gt_ref[0, :, js:js + acc_w].astype(jnp.int32)         # (1, acc_w)

        if activation == 'softmax':
            p = jax.nn.softmax(pred_j, axis=0)
        elif activation == 'sigmoid':
            p = jax.nn.sigmoid(pred_j)
        else:
            p = pred_j

        hit = gt_j == class_ids                                       # (C, acc_w)
        if mask_tail:
            # Mask OOB lane columns of the boundary spatial tile.  Keep selects
            # (not mask-multiplies): padded garbage may be NaN/Inf post-activation.
            col = (m * lane_tile + js
                   + jax.lax.broadcasted_iota(jnp.int32, (1, acc_w), 1))
            lane_valid = col < valid_cols
            hit = hit & lane_valid
            inter_c = jnp.where(hit, p, 0.0)
            zy_c = jnp.where(lane_valid, p, 0.0) + jnp.where(hit, 1.0, 0.0)
        else:
            inter_c = jnp.where(hit, p, 0.0)
            zy_c = p + jnp.where(hit, 1.0, 0.0)

        if j == 0:
            inter_loc, zy_loc = inter_c, zy_c
        else:
            inter_loc += inter_c
            zy_loc += zy_c

    inter_acc[...] += inter_loc
    zy_acc[...] += zy_loc

    # Per-image finalize: single cross-lane reduction + tiny partial write.
    @pl.when(m == pl.num_programs(1) - 1)
    def _():
        inter_out[0] = jnp.sum(inter_acc[...], axis=1, keepdims=True)
        zy_out[0] = jnp.sum(zy_acc[...], axis=1, keepdims=True)


def dice_loss(pred, gt, *, smooth=1.0, activation='sigmoid', tile=8192):
    """pred: (N, C, H, W) float logits; gt: (N, 1, H, W) integer labels."""
    N, C, H, W = pred.shape
    M = H * W  # flattened spatial per image

    # Free, contiguous reshapes only — no transpose, no host-side pad.
    pred3 = pred.reshape(N, C, M)
    gt3 = gt.reshape(N, 1, M)
    if not jnp.issubdtype(gt3.dtype, jnp.integer):
        # Float labels (e.g. from a resize) -> truncate like PyTorch's .long().
        gt3 = gt3.astype(jnp.int32)

    pred_item = pred3.dtype.itemsize
    gt_item = gt3.dtype.itemsize

    # Narrow accumulator width: keep the per-tile vreg-resident partials to a
    # handful of vregs even for large C.
    acc_w = max(128, min(512, (4096 // max(C, 1)) // 128 * 128))

    # Lane tile: multiple of 128, big enough to amortize the ~0.35us/step grid
    # overhead, bounded by a conservative double-buffered input VMEM budget
    # (safe on v5e's 16 MiB scoped default and v7x's 64 MiB physical VMEM).
    budget_bytes = 12 * 1024 * 1024
    per_lane_bytes = 2 * C * pred_item + 2 * gt_item
    max_lane_for_vmem = max(128, (budget_bytes // per_lane_bytes) // 128 * 128)
    lane_tile = min(int(tile), max_lane_for_vmem, pl.cdiv(M, 128) * 128)
    lane_tile = max(128, (lane_tile // 128) * 128)
    acc_w = min(acc_w, lane_tile)
    lane_tile = max(acc_w, (lane_tile // acc_w) * acc_w)

    grid = (N, pl.cdiv(M, lane_tile))
    mask_tail = (M % lane_tile) != 0

    kernel = functools.partial(
        _dice_partials_kernel,
        activation=activation,
        num_classes=C,
        valid_cols=M,
        lane_tile=lane_tile,
        acc_w=acc_w,
        mask_tail=mask_tail,
    )

    inter_p, zy_p = pl.pallas_call(
        kernel,
        out_shape=(
            jax.ShapeDtypeStruct((N, C, 1), jnp.float32),
            jax.ShapeDtypeStruct((N, C, 1), jnp.float32),
        ),
        grid_spec=pltpu.PrefetchScalarGridSpec(
            num_scalar_prefetch=0,
            grid=grid,
            in_specs=[
                pl.BlockSpec((1, C, lane_tile), lambda n, m: (n, 0, m)),
                pl.BlockSpec((1, 1, lane_tile), lambda n, m: (n, 0, m)),
            ],
            out_specs=[
                pl.BlockSpec((1, C, 1), lambda n, m: (n, 0, 0)),
                pl.BlockSpec((1, C, 1), lambda n, m: (n, 0, 0)),
            ],
            scratch_shapes=[
                pltpu.VMEM((C, acc_w), jnp.float32),
                pltpu.VMEM((C, acc_w), jnp.float32),
            ],
        ),
        compiler_params=pltpu.CompilerParams(
            dimension_semantics=("parallel", "arbitrary")),
    )(pred3, gt3)

    # Tiny dice / mean epilogue in plain JAX (global sums over the batch).
    inter = jnp.sum(inter_p[:, :, 0], axis=0)   # (C,)
    zy = jnp.sum(zy_p[:, :, 0], axis=0)         # (C,)
    dice = (2.0 * inter + smooth) / (zy + smooth)
    return 1.0 - jnp.sum(dice) / C


def _dice_loss_ref(pred, gt, smooth=1.0, activation='sigmoid'):
    """Plain-JAX reference matching the PyTorch forward."""
    N, C, H, W = pred.shape
    labels = gt.reshape(N, H, W).astype(jnp.int32)
    one_hot = jax.nn.one_hot(labels, C, dtype=jnp.float32)          # (N,H,W,C)
    one_hot = jnp.transpose(one_hot, (0, 3, 1, 2))                   # (N,C,H,W)
    if activation == 'softmax':
        p = jax.nn.softmax(pred, axis=1)
    elif activation == 'sigmoid':
        p = jax.nn.sigmoid(pred)
    else:
        p = pred
    p = p.astype(jnp.float32)
    loss = 0.0
    for i in range(C):
        intersect = jnp.sum(p[:, i] * one_hot[:, i])
        z_sum = jnp.sum(p[:, i])
        y_sum = jnp.sum(one_hot[:, i])
        loss += (2.0 * intersect + smooth) / (z_sum + y_sum + smooth)
    return 1.0 - loss / C


if __name__ == "__main__":
    key = jax.random.PRNGKey(0)
    k1, k2, k3, k4 = jax.random.split(key, 4)

    # Small NCHW case matching the PyTorch module's expected layout.
    N, C, H, W = 2, 4, 16, 16
    pred = jax.random.normal(k1, (N, C, H, W), dtype=jnp.float32)
    gt = jax.random.randint(k2, (N, 1, H, W), 0, C, dtype=jnp.int32)

    out = jax.block_until_ready(dice_loss(pred, gt, smooth=1.0, activation='sigmoid'))
    ref = _dice_loss_ref(pred, gt, smooth=1.0, activation='sigmoid')
    assert jnp.allclose(out, ref, atol=1e-5, rtol=1e-5), (out, ref)

    # Softmax activation path.
    out_sm = jax.block_until_ready(dice_loss(pred, gt, smooth=1.0, activation='softmax'))
    ref_sm = _dice_loss_ref(pred, gt, smooth=1.0, activation='softmax')
    assert jnp.allclose(out_sm, ref_sm, atol=1e-5, rtol=1e-5), (out_sm, ref_sm)

    # Odd spatial extent + forced small tile: exercises multi-tile spatial
    # accumulation and the boundary-tile lane-masking path.
    N2, C2, H2, W2 = 2, 3, 20, 20
    pred2 = jax.random.normal(k3, (N2, C2, H2, W2), dtype=jnp.float32)
    gt2 = jax.random.randint(k4, (N2, 1, H2, W2), 0, C2, dtype=jnp.int32)
    out2 = jax.block_until_ready(
        dice_loss(pred2, gt2, smooth=1.0, activation='sigmoid', tile=128))
    ref2 = _dice_loss_ref(pred2, gt2, smooth=1.0, activation='sigmoid')
    assert jnp.allclose(out2, ref2, atol=1e-5, rtol=1e-5), (out2, ref2)

    print("KERNEL_OK")
</pallas_src>

<mosaic_0001>
module attributes {stable_mosaic.version = 11 : i64} {
  func.func @_dice_partials_kernel(%arg0: i32, %arg1: i32, %arg2: memref<1x4x256xf32, #tpu.memory_space<vmem>>, %arg3: memref<1x1x256xi32, #tpu.memory_space<vmem>>, %arg4: memref<1x4x1xf32, #tpu.memory_space<vmem>>, %arg5: memref<1x4x1xf32, #tpu.memory_space<vmem>>, %arg6: memref<4x256xf32, #tpu.memory_space<vmem>>, %arg7: memref<4x256xf32, #tpu.memory_space<vmem>>) attributes {dimension_semantics = [#tpu.dimension_semantics<parallel>, #tpu.dimension_semantics<arbitrary>], iteration_bounds = array<i64: 2, 1>, scalar_prefetch = 0 : i64, scratch_operands = 2 : i64, tpu.core_type = #tpu.core_type<tc>, window_params = [{transform_indices = @transform_0, window_bounds = array<i64: 1, 4, 256>}, {transform_indices = @transform_1, window_bounds = array<i64: 1, 1, 256>}, {transform_indices = @transform_2, window_bounds = array<i64: 1, 4, 1>}, {transform_indices = @transform_3, window_bounds = array<i64: 1, 4, 1>}]} {
    %c0_i32 = arith.constant 0 : i32
    %0 = arith.cmpi eq, %arg1, %c0_i32 : i32
    %1 = arith.extui %0 : i1 to i32
    %c0_i32_0 = arith.constant 0 : i32
    %2 = arith.cmpi ne, %1, %c0_i32_0 : i32
    scf.if %2 {
      %cst_19 = arith.constant 0.000000e+00 : f32
      %31 = vector.broadcast %cst_19 : f32 to vector<4x256xf32>
      %c0_20 = arith.constant 0 : index
      %c0_21 = arith.constant 0 : index
      %32 = vector.load %arg6[%c0_20, %c0_21] : memref<4x256xf32, #tpu.memory_space<vmem>>, vector<4x256xf32>
      tpu.vector_store %arg6[%c0_20, %c0_21], %31 {strides = array<i32>} : memref<4x256xf32, #tpu.memory_space<vmem>>, vector<4x256xf32>,
      %cst_22 = arith.constant 0.000000e+00 : f32
      %33 = vector.broadcast %cst_22 : f32 to vector<4x256xf32>
      %c0_23 = arith.constant 0 : index
      %c0_24 = arith.constant 0 : index
      %34 = vector.load %arg7[%c0_23, %c0_24] : memref<4x256xf32, #tpu.memory_space<vmem>>, vector<4x256xf32>
      tpu.vector_store %arg7[%c0_23, %c0_24], %33 {strides = array<i32>} : memref<4x256xf32, #tpu.memory_space<vmem>>, vector<4x256xf32>,
    } else {
    }
    %3 = tpu.iota {dimensions = array<i32: 0>} : vector<4x1xi32>
    %c0 = arith.constant 0 : index
    %c0_1 = arith.constant 0 : index
    %c0_2 = arith.constant 0 : index
    %4 = vector.load %arg2[%c0, %c0_1, %c0_2] : memref<1x4x256xf32, #tpu.memory_space<vmem>>, vector<1x4x256xf32>
    %5 = vector.shape_cast %4 : vector<1x4x256xf32> to vector<4x256xf32>
    %c0_3 = arith.constant 0 : index
    %c0_4 = arith.constant 0 : index
    %c0_5 = arith.constant 0 : index
    %6 = vector.load %arg3[%c0_3, %c0_4, %c0_5] : memref<1x1x256xi32, #tpu.memory_space<vmem>>, vector<1x1x256xi32>
    %7 = vector.shape_cast %6 : vector<1x1x256xi32> to vector<1x256xi32>
    %8 = arith.negf %5 : vector<4x256xf32>
    %9 = math.exp %8 : vector<4x256xf32>
    %cst = arith.constant 1.000000e+00 : f32
    %10 = vector.broadcast %cst : f32 to vector<4x256xf32>
    %11 = arith.addf %10, %9 : vector<4x256xf32>
    %12 = arith.divf %10, %11 : vector<4x256xf32>
    %13 = vector.broadcast %7 : vector<1x256xi32> to vector<4x256xi32>
    %14 = vector.broadcast %3 : vector<4x1xi32> to vector<4x256xi32>
    %15 = arith.cmpi eq, %13, %14 : vector<4x256xi32>
    %cst_6 = arith.constant 0.000000e+00 : f32
    %16 = vector.broadcast %cst_6 : f32 to vector<4x256xf32>
    %17 = arith.select %15, %12, %16 : vector<4x256xi1>, vector<4x256xf32>
    %cst_7 = arith.constant 1.000000e+00 : f32
    %cst_8 = arith.constant 0.000000e+00 : f32
    %18 = vector.broadcast %cst_7 : f32 to vector<4x256xf32>
    %19 = vector.broadcast %cst_8 : f32 to vector<4x256xf32>
    %20 = arith.select %15, %18, %19 : vector<4x256xi1>, vector<4x256xf32>
    %21 = arith.addf %12, %20 : vector<4x256xf32>
    %c0_9 = arith.constant 0 : index
    %c0_10 = arith.constant 0 : index
    %22 = vector.load %arg6[%c0_9, %c0_10] : memref<4x256xf32, #tpu.memory_space<vmem>>, vector<4x256xf32>
    %23 = arith.addf %22, %17 : vector<4x256xf32>
    %c0_11 = arith.constant 0 : index
    %c0_12 = arith.constant 0 : index
    %24 = vector.load %arg6[%c0_11, %c0_12] : memref<4x256xf32, #tpu.memory_space<vmem>>, vector<4x256xf32>
    tpu.vector_store %arg6[%c0_11, %c0_12], %23 {strides = array<i32>} : memref<4x256xf32, #tpu.memory_space<vmem>>, vector<4x256xf32>,
    %c0_13 = arith.constant 0 : index
    %c0_14 = arith.constant 0 : index
    %25 = vector.load %arg7[%c0_13, %c0_14] : memref<4x256xf32, #tpu.memory_space<vmem>>, vector<4x256xf32>
    %26 = arith.addf %25, %21 : vector<4x256xf32>
    %c0_15 = arith.constant 0 : index
    %c0_16 = arith.constant 0 : index
    %27 = vector.load %arg7[%c0_15, %c0_16] : memref<4x256xf32, #tpu.memory_space<vmem>>, vector<4x256xf32>
    tpu.vector_store %arg7[%c0_15, %c0_16], %26 {strides = array<i32>} : memref<4x256xf32, #tpu.memory_space<vmem>>, vector<4x256xf32>,
    %c0_i32_17 = arith.constant 0 : i32
    %28 = arith.cmpi eq, %arg1, %c0_i32_17 : i32
    %29 = arith.extui %28 : i1 to i32
    %c0_i32_18 = arith.constant 0 : i32
    %30 = arith.cmpi ne, %29, %c0_i32_18 : i32
    scf.if %30 {
      %c0_19 = arith.constant 0 : index
      %c0_20 = arith.constant 0 : index
      %31 = vector.load %arg6[%c0_19, %c0_20] : memref<4x256xf32, #tpu.memory_space<vmem>>, vector<4x256xf32>
      %cst_21 = arith.constant dense<0.000000e+00> : vector<4xf32>
      %32 = vector.multi_reduction <add>, %31, %cst_21 [1] : vector<4x256xf32> to vector<4xf32>
      %33 = vector.shape_cast %32 : vector<4xf32> to vector<4x1xf32>
      %c0_22 = arith.constant 0 : index
      %c0_23 = arith.constant 0 : index
      %c0_24 = arith.constant 0 : index
      %34 = vector.load %arg4[%c0_22, %c0_23, %c0_24] : memref<1x4x1xf32, #tpu.memory_space<vmem>>, vector<1x4x1xf32>
      %35 = vector.shape_cast %34 : vector<1x4x1xf32> to vector<4x1xf32>
      %36 = vector.shape_cast %33 : vector<4x1xf32> to vector<1x4x1xf32>
      tpu.vector_store %arg4[%c0_22, %c0_23, %c0_24], %36 {strides = array<i32>} : memref<1x4x1xf32, #tpu.memory_space<vmem>>, vector<1x4x1xf32>,
      %c0_25 = arith.constant 0 : index
      %c0_26 = arith.constant 0 : index
      %37 = vector.load %arg7[%c0_25, %c0_26] : memref<4x256xf32, #tpu.memory_space<vmem>>, vector<4x256xf32>
      %cst_27 = arith.constant dense<0.000000e+00> : vector<4xf32>
      %38 = vector.multi_reduction <add>, %37, %cst_27 [1] : vector<4x256xf32> to vector<4xf32>
      %39 = vector.shape_cast %38 : vector<4xf32> to vector<4x1xf32>
      %c0_28 = arith.constant 0 : index
      %c0_29 = arith.constant 0 : index
      %c0_30 = arith.constant 0 : index
      %40 = vector.load %arg5[%c0_28, %c0_29, %c0_30] : memref<1x4x1xf32, #tpu.memory_space<vmem>>, vector<1x4x1xf32>
      %41 = vector.shape_cast %40 : vector<1x4x1xf32> to vector<4x1xf32>
      %42 = vector.shape_cast %39 : vector<4x1xf32> to vector<1x4x1xf32>
      tpu.vector_store %arg5[%c0_28, %c0_29, %c0_30], %42 {strides = array<i32>} : memref<1x4x1xf32, #tpu.memory_space<vmem>>, vector<1x4x1xf32>,
    } else {
    }
    return
  }
  func.func @transform_0(%arg0: i32, %arg1: i32) -> (i32, i32, i32) {
    %c0_i32 = arith.constant 0 : i32
    %c0_i32_0 = arith.constant 0 : i32
    return %arg0, %c0_i32, %arg1 : i32, i32, i32
  }
  func.func @transform_1(%arg0: i32, %arg1: i32) -> (i32, i32, i32) {
    %c0_i32 = arith.constant 0 : i32
    %c0_i32_0 = arith.constant 0 : i32
    return %arg0, %c0_i32, %arg1 : i32, i32, i32
  }
  func.func @transform_2(%arg0: i32, %arg1: i32) -> (i32, i32, i32) {
    %c0_i32 = arith.constant 0 : i32
    %c0_i32_0 = arith.constant 0 : i32
    %c0_i32_1 = arith.constant 0 : i32
    return %arg0, %c0_i32, %c0_i32_0 : i32, i32, i32
  }
  func.func @transform_3(%arg0: i32, %arg1: i32) -> (i32, i32, i32) {
    %c0_i32 = arith.constant 0 : i32
    %c0_i32_0 = arith.constant 0 : i32
    %c0_i32_1 = arith.constant 0 : i32
    return %arg0, %c0_i32, %c0_i32_0 : i32, i32, i32
  }
}

</mosaic_0001>

<bundles_post_ra>
// kernel: tpu_custom_call.1
= control target key start
LH: loop header
LB: loop body
LE: loop exit
PB: predicated region body
PF: predicated region fallthrough
CT: control target
= control target key end

     0   :  { %9 = vsyncpa [#allocation5], 0  ;;  %s858_s0 = inlined_call_operand.hbm [shape: f32[2,4,256], index: 0, kind: input, shape index: {}]   ;;  %s859_s1 = inlined_call_operand.hbm [shape: s32[2,1,256], index: 1, kind: input, shape index: {}]   ;;  %s860_s2 = inlined_call_operand.vmem [shape: f32[2,4,1], index: 2, kind: output, shape index: {0}]   ;;  %s861_s3 = inlined_call_operand.vmem [shape: f32[2,4,1], index: 3, kind: output, shape index: {1}]  }
   0x1   :  { %11 = vsyncpa [#allocation5 + $0x1], 0 }
   0x2   :  { %12 = vsyncpa [#allocation7], 0 }
   0x3   :  { %14 = vsyncpa [#allocation7 + $0x1], 0  ;;  %s689_s12 = smov 0   ;;  %s691_s13 = smov 0  }
   0x4   :  { %s693_s14 = smov 0   ;;  %s695_s15 = smov 0  }
   0x5   :  { %s697_s16 = smov 0   ;;  %s699_s17 = smov 0  }
   0x6 LB: > { %s464_s18 = sadd.s32 4294967295, %s664_s17   ;;  %s32_s19 = sadd.s32 1, %s660_s16  ;;  %s664_s17 = sphi %s699_s17, %s20_s17   ;;  %s660_s16 = sphi %s697_s16, %s875_s16   ;;  %s656_s15 = sphi %s695_s15, %s874_s15   ;;  %s652_s14 = sphi %s693_s14, %s873_s14   ;;  %s648_s13 = sphi %s691_s13, %s872_s13   ;;  %s644_s12 = sphi %s689_s12, %s871_s12  }
   0x7   : > { %p34_p0 = scmp.ge.s32.totalorder %s32_s19, 2  ;;  %s41_s20 = sadd.s32 1, %s652_s14 }
   0x8   : > { %p48_p1 = scmp.ne.s32.totalorder %s652_s14, %s648_s13  ;;  %p49_p2 = scmp.eq.s32.totalorder %s664_s17, 0 }
   0x9   : > { %s877_s19 = smov (%p34_p0, %s32_s19), 0  ;;  %p54_p4 = scmp.ne.s32.totalorder %s648_s13, %s644_s12 }
   0xa   : > { %p725_p3 = por %p49_p2, %p48_p1  ;;  %s36_s22 = ssub.s32 %s660_s16, %s877_s19 }
   0xb   : > { %p55_p5 = scmp.eq.s32.totalorder %s464_s18, 0  ;;  %p39_p6 = scmp.eq.s32.totalorder %s36_s22, 0 }
   0xc   : > { %p496_p8 = scmp.lt.s32.totalorder %s664_s17, 2  ;;  %s741_s25 = sand.u32 1, %s652_s14  }
   0xd   : > { %p732_p7 = por %p55_p5, %p54_p4  ;;  %s482_s26 = sshll.u32 %s660_s16, 7 }
   0xe   : > { %s738_s24 = scalar_select %p39_p6, %s652_s14, %s41_s20  }
   0xf   : > { %s864_s23 = scalar_select %p732_p7, 1, 0 }
  0x10   : > { %s468_s27 = sshll.u32 %s741_s25, 3  ;;  %s748_s30 = scalar_lea.hbm %s858_s0, %s482_s26 }
  0x11   : > { %s162_s4 = scalar_lea.vmem [#allocation4], %s468_s27  ;;  %p752_p9 = pnand %p496_p8, %p725_p3 }
  0x12   : > { %s172_s5 = sshll.u32 %s162_s4, 4  ;;  %s159_s7 = scalar_lea.sflag [#allocation5], %s741_s25  ;;  %s756_s5 = int_to_ptr.vmem [resolvable:$true] %s172_s5 }
  0x13   : > { %s550_s8 = scalar_lea.hbm %s748_s30, 128  ;;  %p552_p13 = pneg %p752_p9 }
  0x14   : > { %p551_p12 = scmp.ne.s32.totalorder %s748_s30, %s550_s8  ;;  %s555_s11 = scalar_lea.hbm %s858_s0, 256 }
  0x15   : > { %p556_p2 = scmp.lt.u32.totalorder %s748_s30, %s858_s0  ;;  %p557_p3 = scmp.lt.u32.totalorder %s555_s11, %s550_s8 }
  0x16   : > { %p553_p0 = pnand %p552_p13, %p551_p12  ;;  %p559_p5 = scmp.lt.u32.totalorder %s550_s8, %s748_s30 }
  0x17   : > { %p558_p4 = por %p557_p3, %p556_p2 }
  0x18   : > { %p554_p1 = pneg %p553_p0 }
  0x19   : > { %p560_p6 = por %p559_p5, %p558_p4 }
  0x1b   : > { %p561_p8 = pnand %p560_p6, %p554_p1 }
  0x1d   : > { %564 = shalt.err (!%p561_p8)
}
  0x1e   : > { %s565_s20 = scalar_lea.vmem %s756_s5, 128  ;;  %s666_s21 = smov [#allocation4]  }
  0x1f   : > { %p566_p12 = scmp.ne.s32.totalorder %s756_s5, %s565_s20  ;;  %s570_s22 = sshll.u32 %s666_s21, 4  ;;  %s571_s22 = int_to_ptr.vmem [resolvable:$false] %s570_s22 }
  0x20   : > { %s572_s26 = scalar_lea.vmem %s571_s22, 256  ;;  %p573_p11 = scmp.lt.s32.totalorder %s756_s5, %s571_s22 }
  0x21   : > { %p568_p0 = pnand %p566_p12, %p552_p13  ;;  %p574_p2 = scmp.lt.s32.totalorder %s572_s26, %s565_s20 }
  0x23   : > { %p569_p10 = pneg %p568_p0  ;;  %p575_p3 = por %p574_p2, %p573_p11 }
  0x25   : > { %p576_p4 = pnand %p575_p3, %p569_p10 }
  0x27   : > { %579 = shalt.err (!%p576_p4)
}
  0x28   : > { %492 = dma.hbm_to_vmem [thread:$0]  (!%p752_p9), %s748_s30, 128, %s756_s5, %s159_s7  }
  0x29   : > { %p866_p1 = scmp.lt.s32.totalorder %s664_s17, 3  ;;  %p867_p5 = scmp.ge.s32.totalorder %s664_s17, 1 }
  0x2a   : > { %s471_s28 = sshll.u32 %s741_s25, 1  ;;  %s483_s29 = sshll.u32 %s660_s16, 5 }
  0x2b   : > { %p790_p6 = pnand %p867_p5, %p866_p1  ;;  %s799_s9 = scalar_lea.hbm %s859_s1, %s483_s29 }
  0x2c   : > { %s183_s10 = scalar_lea.vmem [#allocation6], %s471_s28  ;;  %s180_s30 = scalar_lea.sflag [#allocation7], %s741_s25 }
  0x2d   : > { %s868_s27 = scalar_select %p790_p6, 1, 0 }
  0x2e   : > { %s193_s11 = sshll.u32 %s183_s10, 4  ;;  %s580_s5 = scalar_lea.hbm %s799_s9, 32  ;;  %s194_s11 = int_to_ptr.vmem [resolvable:$true] %s193_s11 }
  0x2f   : > { %p581_p10 = scmp.ne.s32.totalorder %s799_s9, %s580_s5  ;;  %s585_s18 = scalar_lea.hbm %s859_s1, 64 }
  0x30   : > { %p586_p12 = scmp.lt.u32.totalorder %s799_s9, %s859_s1  ;;  %p587_p0 = scmp.lt.u32.totalorder %s585_s18, %s580_s5 }
  0x31   : > { %p583_p11 = pnand %p581_p10, %p552_p13  ;;  %p589_p3 = scmp.lt.u32.totalorder %s580_s5, %s799_s9 }
  0x32   : > { %p588_p2 = por %p587_p0, %p586_p12 }
  0x33   : > { %p584_p8 = pneg %p583_p11 }
  0x34   : > { %p590_p4 = por %p589_p3, %p588_p2 }
  0x36   : > { %p591_p1 = pnand %p590_p4, %p584_p8 }
  0x38   : > { %594 = shalt.err (!%p591_p1)
}
  0x39   : > { %s595_s25 = scalar_lea.vmem %s194_s11, 32  ;;  %s667_s22 = smov [#allocation6]  }
  0x3a   : > { %p596_p5 = scmp.ne.s32.totalorder %s194_s11, %s595_s25  ;;  %s600_s26 = sshll.u32 %s667_s22, 4  ;;  %s601_s26 = int_to_ptr.vmem [resolvable:$false] %s600_s26 }
  0x3b   : > { %s602_s28 = scalar_lea.vmem %s601_s26, 64  ;;  %p603_p7 = scmp.lt.s32.totalorder %s194_s11, %s601_s26 }
  0x3c   : > { %p598_p10 = pnand %p596_p5, %p552_p13  ;;  %p604_p6 = scmp.lt.s32.totalorder %s602_s28, %s595_s25 }
  0x3e   : > { %p599_p11 = pneg %p598_p10  ;;  %p605_p0 = por %p604_p6, %p603_p7 }
  0x40   : > { %p606_p12 = pnand %p605_p0, %p599_p11 }
  0x42   : > { %609 = shalt.err (!%p606_p12)
}
  0x43   : > { %495 = dma.hbm_to_vmem [thread:$0]  (!%p752_p9), %s799_s9, 32, %s194_s11, %s180_s30  }
  0x44   : > { %p869_p8 = scmp.ne.s32.totalorder %s868_s27, 0 }
  0x45   : > { %s204_s29 = sand.u32 (!%p869_p8), 1, %s648_s13   ;;  %p870_p13 = scmp.ne.s32.totalorder (!%p869_p8), %s864_s23, 0 }
  0x46   : > { %202 = sbr.rel (%p869_p8) target bundleno = 263 (0x107), region = 28  ;;  %s475_s4 = sshll.u32 (!%p869_p8), %s204_s29, 3 }
  0x47   : > { %s205_s8 = scalar_lea.sflag (!%p869_p8), [#allocation5], %s204_s29  ;;  %s208_s10 = scalar_lea.vmem (!%p869_p8), [#allocation4], %s475_s4 }
  0x4d   : > { %635 = dma.done.wait (%p870_p13), %s205_s8, 128  }
  0x4e   : > { %637 = vsyncadd (%p870_p13), %s205_s8, 4294967168  ;;  %s476_s5 = sshll.u32 %s204_s29, 1  ;;  %s214_s7 = scalar_lea.sflag [#allocation7], %s204_s29 }
  0x4f   : > { %s217_s6 = scalar_lea.vmem [#allocation6], %s476_s5 }
  0x50   : > { %639 = dma.done.wait (%p870_p13), %s214_s7, 32  }
  0x51   : > { %641 = vsyncadd (%p870_p13), %s214_s7, 4294967264  ;;  %v266_v0 = vld [vmem:[%s208_s10] sm:$0xff]  ;;  %v264_v2 = vlaneseq  ;;  %v267_v6 = vld [vmem:[%s217_s6] sm:$0x3]  ;;  %v668_v11 = vmov 0.0   ;;  %vm313_vm2 = vcmask 1043456  }
  0x52   : > { %v479_v1 = vmul.f32 -1.442695, %v266_v0  ;;  %p250_p7 = scmp.lt.s32.totalorder %s656_s15, 1  ;;  %vm319_vm3 = vcmask 3072  }
  0x53   : > { %v265_v3 = vshrl.u32 %v264_v2, 7 }
  0x54   : > { %546 = vpow2.f32 %v479_v1  ;;  %s879_s15 = smov (!%p250_p7, %s656_s15), 1 }
  0x55   : > { %v276_v4 = vsub.s32 0, %v265_v3  ;;  %v280_v5 = vsub.s32 1, %v265_v3  ;;  %s477_s23 = sshll.u32 %s879_s15, 2 }
  0x56   : > { %s253_s11 = scalar_lea.vmem %s860_s2, %s477_s23  ;;  %s257_s18 = scalar_lea.vmem %s861_s3, %s477_s23 }
  0x57   : > { %v277_v8 = vrot.slane %v267_v6, %v276_v4  ;;  %v281_v9 = vrot.slane %v267_v6, %v280_v5 }
  0x59   : > { %vm282_vm0 = vcmp.eq.s32.totalorder %v277_v8, %v265_v3  ;;  %vm283_vm1 = vcmp.eq.s32.totalorder %v281_v9, %v265_v3 }
  0x5a   : > { %v289_v12 = vsel %vm282_vm0, 1.0, %v668_v11  ;;  %v290_v13 = vsel %vm283_vm1, 1.0, %v668_v11 }
  0x5b   : > { %v293_v14 = vcombine.low %v289_v12, %v290_v13 }
  0x5e   : > { %v547_v7 = vpop.eup %546 }
  0x5f   : > { %v271_v10 = vadd.f32 1.0, %v547_v7 }
  0x61   : > { %548 = vrcp.f32 %v271_v10 }
  0x6b   : > { %v549_v15 = vpop.eup %548 }
  0x6c   : > { %v285_v16 = vcombine.high %v549_v15, %v549_v15  ;;  %v287_v17 = vsel %vm282_vm0, %v549_v15, 0.0  ;;  %v295_v18 = vadd.f32 %v549_v15, %v293_v14 }
  0x6e   : > { %v288_v19 = vsel %vm283_vm1, %v285_v16, 0.0  ;;  %v323_v20 = vcombine.high %v295_v18, %v295_v18  ;;  %v325_v25 = vsel %vm313_vm2, %v295_v18, 0.0 }
  0x6f   : > { %v299_v21 = vcombine.low %v287_v17, %v288_v19  ;;  %v484_v22 = vcombine.low %v288_v19, %v288_v19 }
  0x70   : > { %v326_v26 = vsel %vm313_vm2, %v323_v20, 0.0 }
  0x71   : > { %v314_v23 = vsel %vm313_vm2, %v299_v21, 0.0  ;;  %v315_v24 = vsel %vm313_vm2, %v484_v22, 0.0  ;;  %v327_v28 = vadd.f32 %v326_v26, %v325_v25 }
  0x72   : > { %v316_v27 = vadd.f32 %v315_v24, %v314_v23 }
  0x74   : > { %317 = vadd.xlane.f32.xlu0 %v316_v27 }
  0x78   : > { %328 = vadd.xlane.f32.xlu0 %v327_v28 }
 0x101   : > { %v318_v29 = vpop.xlane.xlu0 %317 }
 0x102   : > { %320 = vst.msk [vmem:[%s253_s11] sm:$0xf] %vm319_vm3, %v318_v29 }
 0x105   : > { %v329_v30 = vpop.xlane.xlu0 %328 }
 0x106   : > { %330 = vst.msk [vmem:[%s257_s18] sm:$0xf] %vm319_vm3, %v329_v30 }
 0x107 PF: > { %s20_s17 = sadd.s32 1, %s664_s17   ;;  %s871_s12 = smov %s648_s13 }
 0x108   : > { %p17_p9 = scmp.ge.s32.totalorder %s20_s17, 4   ;;  %s872_s13 = smov %s652_s14 }
 0x109   : > { %s873_s14 = smov %s738_s24  ;;  %s874_s15 = smov %s660_s16 }
 0x10a   : > { %s875_s16 = smov %s877_s19  ;;  %19 = sbr.rel (!%p17_p9) target bundleno = 6 (0x6), region = 101 }
 0x111   :  { %364 = vsyncpa [#allocation5], 1 }
 0x112   :  { %366 = vsyncpa [#allocation5 + $0x1], 1 }
 0x113   :  { %367 = vsyncpa [#allocation7], 1 }
 0x114   :  { %369 = vsyncpa [#allocation7 + $0x1], 1 }

</bundles_post_ra>
